<compile_context>
chip_gen: v5e
topology: v5e:2x2
jax: 0.10.0
libtpu: 0.0.40
codegen_flags: <defaults>
</compile_context>

<pallas_src>
import math
import numpy as np
import jax
import jax.numpy as jnp
from jax.experimental import pallas as pl
from jax.experimental.pallas import tpu as pltpu


def _round_up(x, m):
    return ((x + m - 1) // m) * m


# ---------------------------------------------------------------------------
# Kernels
# ---------------------------------------------------------------------------
def ffn_kernel_multi_k(x_ref, w1_ref, b1_ref, w2_ref, b2_ref, o_ref, acc_ref):
    """Grid = (M tiles, F tiles). f32 accumulator resident across the k axis."""
    k = pl.program_id(1)

    @pl.when(k == 0)
    def _init():
        acc_ref[...] = jnp.zeros_like(acc_ref)

    x = x_ref[...].astype(w1_ref.dtype)              # cast in VMEM (x stays f32 in HBM)
    h = jnp.dot(x, w1_ref[...], preferred_element_type=jnp.float32)
    h = jnp.maximum(h + b1_ref[...], 0.0)            # bias + ReLU in f32
    # dropout (eval mode) == identity
    acc_ref[...] += jnp.dot(h.astype(w2_ref.dtype), w2_ref[...],
                            preferred_element_type=jnp.float32)

    @pl.when(k == pl.num_programs(1) - 1)
    def _finish():
        o_ref[...] = (acc_ref[...] + b2_ref[...]).astype(o_ref.dtype)


def ffn_kernel_single_k(x_ref, w1_ref, b1_ref, w2_ref, b2_ref, o_ref):
    """F fits in one filter tile: write straight to o_ref, no accumulator scratch."""
    x = x_ref[...].astype(w1_ref.dtype)
    h = jnp.dot(x, w1_ref[...], preferred_element_type=jnp.float32)
    h = jnp.maximum(h + b1_ref[...], 0.0)
    # dropout (eval mode) == identity
    o_ref[...] = (jnp.dot(h.astype(w2_ref.dtype), w2_ref[...],
                          preferred_element_type=jnp.float32)
                  + b2_ref[...]).astype(o_ref.dtype)


# ---------------------------------------------------------------------------
# Hardware-aware tile selection
# ---------------------------------------------------------------------------
def _tpu_info():
    """Returns (device_kind lowercase, physical per-core VMEM bytes)."""
    kind = ""
    try:
        kind = jax.devices()[0].device_kind.lower()
    except Exception:
        pass
    vmem = None
    try:
        vmem = int(pltpu.get_tpu_info().vmem_capacity_bytes)
    except Exception:
        vmem = None
    if not vmem or vmem <= 0:
        if "v7" in kind:
            vmem = 64 * 1024 * 1024
        elif any(g in kind for g in ("v4", "v5", "v6")):
            vmem = 128 * 1024 * 1024
        else:
            vmem = 64 * 1024 * 1024          # conservative fallback
    return kind, vmem


def _default_tiles(kind):
    if "v7" in kind:
        return 512, 512      # 64 MiB VMEM: spend it on tm, keep tf modest
    if "v6" in kind:
        return 1024, 1024    # 128 MiB VMEM + 918 TF/s MXU: big tiles -> compute-bound
    return 512, 512          # v5e / v5p / v4 / unknown


def _vmem_estimate(tm, tf, H, in_b, c_b, o_b, x_bufs, out_bufs, multi_k):
    est = (x_bufs * tm * H * in_b            # x tiles (input dtype; cast in kernel)
           + out_bufs * tm * H * o_b         # output tiles
           + 2 * H * tf * c_b                # W1 (double-buffered: changes along k)
           + 2 * tf * H * c_b                # W2
           + 2 * 8 * tf * 4 + 8 * H * 4      # b1 (sublane-padded, db) + b2
           + tm * tf * 4)                    # (tm, tf) f32 hidden temporary
    if multi_k:
        est += tm * H * 4                    # f32 accumulator scratch
    return int(est)


# ---------------------------------------------------------------------------
# Wrapper
# ---------------------------------------------------------------------------
def feed_forward_network(x, w1, b1, w2, b2, *, tm=None, tf=None,
                         compute_dtype=jnp.bfloat16):
    """x: [B, S, H] -> [B, S, H].  Weights stored [in, out] so kernel does x @ W + b.

    Dropout is eval-mode (identity)."""
    B, S, H = x.shape
    Hw, F = w1.shape
    assert Hw == H and w2.shape == (F, H), "weight shapes must be [in, out]"
    M = B * S
    in_dtype = x.dtype
    out_dtype = x.dtype

    kind, vmem_phys = _tpu_info()
    vmem_budget = int(vmem_phys * 0.85)      # leave headroom for Mosaic internals
    tm0, tf0 = _default_tiles(kind)
    if tm is not None:
        tm0 = tm
    if tf is not None:
        tf0 = tf

    in_b = np.dtype(in_dtype).itemsize
    c_b = np.dtype(compute_dtype).itemsize
    o_b = np.dtype(out_dtype).itemsize

    # ---- tile selection --------------------------------------------------
    # Row tile: large (amortizes weight re-streaming + grid-step overhead),
    # 16-aligned (bf16 sublane packing), never larger than the token count.
    tm_eff = min(_round_up(tm0, 16), _round_up(M, 16))
    M_pad = _round_up(M, tm_eff)

    # Filter tile: full F when small, otherwise a 128-lane-aligned tile.
    if F <= tf0:
        tf_eff, F_pad = F, F
    else:
        tf_eff = _round_up(min(tf0, F), 128)
        F_pad = _round_up(F, tf_eff)

    # v7x megacore: the parallel M axis is sharded across 2 TensorCores; avoid a
    # single M tile (one core idle) when there is enough work to split.
    if "v7" in kind and M_pad // tm_eff == 1 and M >= 32:
        tm_eff = _round_up((M + 1) // 2, 16)
        M_pad = _round_up(M, tm_eff)

    # ---- VMEM-aware buffering ladder ------------------------------------
    # Output is written once per M tile (at the last k step), so dropping it to a
    # single buffer has a whole k-loop of writeback slack; x changes once per M
    # tile too. Only shrink tiles if single-buffering is still not enough.
    x_bufs, out_bufs = 2, 2
    for _ in range(16):
        multi_k = (F_pad // tf_eff) > 1
        est = _vmem_estimate(tm_eff, tf_eff, H, in_b, c_b, o_b,
                             x_bufs, out_bufs, multi_k)
        if est <= vmem_budget:
            break
        if out_bufs == 2:
            out_bufs = 1
        elif x_bufs == 2:
            x_bufs = 1
        elif tf_eff > 512 and F > 512:
            tf_eff = max(512, _round_up(tf_eff // 2, 128))
            F_pad = _round_up(F, tf_eff)
        elif tm_eff > 256:
            tm_eff = max(256, _round_up(tm_eff // 2, 16))
            M_pad = _round_up(M, tm_eff)
        else:
            break

    multi_k = (F_pad // tf_eff) > 1
    num_m = M_pad // tm_eff
    num_k = F_pad // tf_eff

    # ---- pad / cast operands --------------------------------------------
    x2d = x.reshape(M, H)                     # NOT cast here: kernel casts in VMEM
    if M_pad != M:
        x2d = jnp.pad(x2d, ((0, M_pad - M), (0, 0)))
    w1c = w1.astype(compute_dtype)
    w2c = w2.astype(compute_dtype)
    b1p = b1.astype(jnp.float32)
    if F_pad != F:
        w1c = jnp.pad(w1c, ((0, 0), (0, F_pad - F)))
        w2c = jnp.pad(w2c, ((0, F_pad - F), (0, 0)))
        b1p = jnp.pad(b1p, (0, F_pad - F))
    b1_2d = b1p.reshape(1, F_pad)
    b2_2d = b2.astype(jnp.float32).reshape(1, H)

    # ---- VMEM limit & cost estimate --------------------------------------
    est = _vmem_estimate(tm_eff, tf_eff, H, in_b, c_b, o_b,
                         x_bufs, out_bufs, multi_k)
    vmem_limit = min(vmem_budget, max(int(est * 1.5), 32 * 1024 * 1024))
    vmem_limit = int(max(vmem_limit, est))

    cost = pl.CostEstimate(
        flops=4 * M * H * F,                               # two matmuls
        transcendentals=0,
        bytes_accessed=(M_pad * H * in_b                   # x read once
                        + num_m * 2 * H * F_pad * c_b      # W1+W2 re-streamed per M tile
                        + num_m * (F_pad + H) * 4          # biases per M tile
                        + M_pad * H * o_b),                # out write
    )

    # ---- specs & call ----------------------------------------------------
    def _spec(shape, index_map, bufs=2):
        if bufs == 2:
            return pl.BlockSpec(shape, index_map)
        return pl.BlockSpec(shape, index_map, pipeline_mode=pl.Buffered(bufs))

    in_specs = [
        _spec((tm_eff, H), lambda i, k: (i, 0), x_bufs),       # x tile
        pl.BlockSpec((H, tf_eff), lambda i, k: (0, k)),        # W1 tile
        pl.BlockSpec((1, tf_eff), lambda i, k: (0, k)),        # b1 tile
        pl.BlockSpec((tf_eff, H), lambda i, k: (k, 0)),        # W2 tile
        pl.BlockSpec((1, H), lambda i, k: (0, 0)),             # b2 (grid-invariant)
    ]
    out_spec = _spec((tm_eff, H), lambda i, k: (i, 0), out_bufs)

    if multi_k:
        kernel = ffn_kernel_multi_k
        scratch = [pltpu.VMEM((tm_eff, H), jnp.float32)]
    else:
        kernel = ffn_kernel_single_k
        scratch = []

    out2d = pl.pallas_call(
        kernel,
        out_shape=jax.ShapeDtypeStruct((M_pad, H), out_dtype),
        grid_spec=pltpu.PrefetchScalarGridSpec(
            num_scalar_prefetch=0,
            grid=(num_m, num_k),
            in_specs=in_specs,
            out_specs=out_spec,
            scratch_shapes=scratch,
        ),
        compiler_params=pltpu.CompilerParams(
            dimension_semantics=("parallel", "arbitrary"),
            vmem_limit_bytes=vmem_limit,
        ),
        cost_estimate=cost,
    )(x2d, w1c, b1_2d, w2c, b2_2d)

    return out2d[:M].reshape(B, S, H)


# ---------------------------------------------------------------------------
# Reference / test
# ---------------------------------------------------------------------------
def xavier_uniform(key, fan_in, fan_out, shape, dtype=jnp.float32):
    bound = math.sqrt(6.0 / (fan_in + fan_out))
    return jax.random.uniform(key, shape, dtype=dtype, minval=-bound, maxval=bound)


def _ref_ffn(x, w1, b1, w2, b2):
    B, S, H = x.shape
    h = jnp.maximum(x.reshape(-1, H) @ w1 + b1, 0.0)
    return (h @ w2 + b2).reshape(B, S, H)


if __name__ == "__main__":
    key = jax.random.PRNGKey(0)
    k1, k2, k3, k4, k5, k6, k7, k8 = jax.random.split(key, 8)

    # --- Case 1: batch=2, seq=8, hidden=32, filter=64 (single-filter-tile path,
    #     biases zero as in the module's initialize_weight). -------------------
    x1 = jax.random.normal(k1, (2, 8, 32), dtype=jnp.float32)
    w1a = xavier_uniform(k2, 32, 64, (32, 64))
    b1a = jnp.zeros((64,), jnp.float32)
    w2a = xavier_uniform(k3, 64, 32, (64, 32))
    b2a = jnp.zeros((32,), jnp.float32)
    ref1 = _ref_ffn(x1, w1a, b1a, w2a, b2a)

    out1_f32 = jax.block_until_ready(
        feed_forward_network(x1, w1a, b1a, w2a, b2a, compute_dtype=jnp.float32))
    assert jnp.allclose(out1_f32, ref1, atol=1e-5, rtol=1e-5), "case1 f32 mismatch"

    out1_bf16 = jax.block_until_ready(feed_forward_network(x1, w1a, b1a, w2a, b2a))
    assert jnp.allclose(out1_bf16, ref1, atol=5e-2, rtol=5e-2), "case1 bf16 mismatch"

    # --- Case 2: ragged M (batch=2, seq=7), filter=256 tiled with tf=128 so the
    #     accumulator kernel, k-reduction grid axis and padding are exercised;
    #     non-zero biases to validate the bias path. ---------------------------
    x2 = jax.random.normal(k4, (2, 7, 32), dtype=jnp.float32)
    w1b = xavier_uniform(k5, 32, 256, (32, 256))
    b1b = 0.05 * jax.random.normal(k7, (256,), dtype=jnp.float32)
    w2b = xavier_uniform(k6, 256, 32, (256, 32))
    b2b = 0.05 * jax.random.normal(k8, (32,), dtype=jnp.float32)
    ref2 = _ref_ffn(x2, w1b, b1b, w2b, b2b)

    out2_f32 = jax.block_until_ready(
        feed_forward_network(x2, w1b, b1b, w2b, b2b, tf=128,
                             compute_dtype=jnp.float32))
    assert jnp.allclose(out2_f32, ref2, atol=1e-5, rtol=1e-5), "case2 f32 mismatch"

    out2_bf16 = jax.block_until_ready(
        feed_forward_network(x2, w1b, b1b, w2b, b2b, tf=128))
    assert jnp.allclose(out2_bf16, ref2, atol=5e-2, rtol=5e-2), "case2 bf16 mismatch"

    print("KERNEL_OK")
</pallas_src>

<mosaic_0001>
module attributes {stable_mosaic.version = 11 : i64} {
  func.func @ffn_kernel_single_k(%arg0: i32, %arg1: i32, %arg2: memref<16x32xf32, #tpu.memory_space<vmem>>, %arg3: memref<32x64xf32, #tpu.memory_space<vmem>>, %arg4: memref<1x64xf32, #tpu.memory_space<vmem>>, %arg5: memref<64x32xf32, #tpu.memory_space<vmem>>, %arg6: memref<1x32xf32, #tpu.memory_space<vmem>>, %arg7: memref<16x32xf32, #tpu.memory_space<vmem>>) attributes {dimension_semantics = [#tpu.dimension_semantics<parallel>, #tpu.dimension_semantics<arbitrary>], iteration_bounds = array<i64: 1, 1>, scalar_prefetch = 0 : i64, scratch_operands = 0 : i64, tpu.core_type = #tpu.core_type<tc>, window_params = [{transform_indices = @transform_0, window_bounds = array<i64: 16, 32>}, {transform_indices = @transform_1, window_bounds = array<i64: 32, 64>}, {transform_indices = @transform_2, window_bounds = array<i64: 1, 64>}, {transform_indices = @transform_3, window_bounds = array<i64: 64, 32>}, {pipeline_mode = #tpu.pipeline_mode<synchronous>, transform_indices = @transform_4, window_bounds = array<i64: 1, 32>}, {transform_indices = @transform_5, window_bounds = array<i64: 16, 32>}]} {
    %c0 = arith.constant 0 : index
    %c0_0 = arith.constant 0 : index
    %0 = vector.load %arg2[%c0, %c0_0] : memref<16x32xf32, #tpu.memory_space<vmem>>, vector<16x32xf32>
    %c0_1 = arith.constant 0 : index
    %c0_2 = arith.constant 0 : index
    %1 = vector.load %arg3[%c0_1, %c0_2] : memref<32x64xf32, #tpu.memory_space<vmem>>, vector<32x64xf32>
    %cst = arith.constant dense<0.000000e+00> : vector<16x64xf32>
    %2 = tpu.matmul %0, %1, %cst {dimension_numbers = #tpu.dot_dimension_numbers<[1], [0], [0], [1], [0, 0, 1, 1], [], []>} : vector<16x32xf32>, vector<32x64xf32>, vector<16x64xf32> -> vector<16x64xf32>
    %c0_3 = arith.constant 0 : index
    %c0_4 = arith.constant 0 : index
    %3 = vector.load %arg4[%c0_3, %c0_4] : memref<1x64xf32, #tpu.memory_space<vmem>>, vector<1x64xf32>
    %4 = vector.broadcast %3 : vector<1x64xf32> to vector<16x64xf32>
    %5 = arith.addf %2, %4 : vector<16x64xf32>
    %cst_5 = arith.constant 0.000000e+00 : f32
    %6 = vector.broadcast %cst_5 : f32 to vector<16x64xf32>
    %7 = arith.maximumf %5, %6 : vector<16x64xf32>
    %c0_6 = arith.constant 0 : index
    %c0_7 = arith.constant 0 : index
    %8 = vector.load %arg5[%c0_6, %c0_7] : memref<64x32xf32, #tpu.memory_space<vmem>>, vector<64x32xf32>
    %cst_8 = arith.constant dense<0.000000e+00> : vector<16x32xf32>
    %9 = tpu.matmul %7, %8, %cst_8 {dimension_numbers = #tpu.dot_dimension_numbers<[1], [0], [0], [1], [0, 0, 1, 1], [], []>} : vector<16x64xf32>, vector<64x32xf32>, vector<16x32xf32> -> vector<16x32xf32>
    %c0_9 = arith.constant 0 : index
    %c0_10 = arith.constant 0 : index
    %10 = vector.load %arg6[%c0_9, %c0_10] : memref<1x32xf32, #tpu.memory_space<vmem>>, vector<1x32xf32>
    %11 = vector.broadcast %10 : vector<1x32xf32> to vector<16x32xf32>
    %12 = arith.addf %9, %11 : vector<16x32xf32>
    %c0_11 = arith.constant 0 : index
    %c0_12 = arith.constant 0 : index
    %13 = vector.load %arg7[%c0_11, %c0_12] : memref<16x32xf32, #tpu.memory_space<vmem>>, vector<16x32xf32>
    tpu.vector_store %arg7[%c0_11, %c0_12], %12 {strides = array<i32>} : memref<16x32xf32, #tpu.memory_space<vmem>>, vector<16x32xf32>,
    return
  }
  func.func @transform_0(%arg0: i32, %arg1: i32) -> (i32, i32) {
    %c0_i32 = arith.constant 0 : i32
    %c0_i32_0 = arith.constant 0 : i32
    return %arg0, %c0_i32 : i32, i32
  }
  func.func @transform_1(%arg0: i32, %arg1: i32) -> (i32, i32) {
    %c0_i32 = arith.constant 0 : i32
    %c0_i32_0 = arith.constant 0 : i32
    return %c0_i32, %arg1 : i32, i32
  }
  func.func @transform_2(%arg0: i32, %arg1: i32) -> (i32, i32) {
    %c0_i32 = arith.constant 0 : i32
    %c0_i32_0 = arith.constant 0 : i32
    return %c0_i32, %arg1 : i32, i32
  }
  func.func @transform_3(%arg0: i32, %arg1: i32) -> (i32, i32) {
    %c0_i32 = arith.constant 0 : i32
    %c0_i32_0 = arith.constant 0 : i32
    return %arg1, %c0_i32 : i32, i32
  }
  func.func @transform_4(%arg0: i32, %arg1: i32) -> (i32, i32) {
    %c0_i32 = arith.constant 0 : i32
    %c0_i32_0 = arith.constant 0 : i32
    %c0_i32_1 = arith.constant 0 : i32
    return %c0_i32, %c0_i32_0 : i32, i32
  }
  func.func @transform_5(%arg0: i32, %arg1: i32) -> (i32, i32) {
    %c0_i32 = arith.constant 0 : i32
    %c0_i32_0 = arith.constant 0 : i32
    return %arg0, %c0_i32 : i32, i32
  }
}

</mosaic_0001>

<bundles_post_ra>
// kernel: tpu_custom_call.1
= control target key start
LH: loop header
LB: loop body
LE: loop exit
PB: predicated region body
PF: predicated region fallthrough
CT: control target
= control target key end

     0   :  { %s260_s0 = inlined_call_operand.vmem [shape: f32[16,32], index: 0, kind: input, shape index: {}]   ;;  %s261_s1 = inlined_call_operand.vmem [shape: f32[32,64], index: 1, kind: input, shape index: {}]   ;;  %s262_s2 = inlined_call_operand.vmem [shape: f32[1,64], index: 2, kind: input, shape index: {}]   ;;  %s263_s3 = inlined_call_operand.vmem [shape: f32[64,32], index: 3, kind: input, shape index: {}]   ;;  %s264_s4 = inlined_call_operand.vmem [shape: f32[1,32], index: 4, kind: input, shape index: {}]   ;;  %s265_s5 = inlined_call_operand.hbm [shape: f32[16,32], index: 5, kind: output, shape index: {}]  }
   0x1   :  { %v26_v0 = vld [vmem:[%s261_s1 + $0x18] sm:$0xff]  ;;  %v25_v1 = vld [vmem:[%s261_s1 + $0x10] sm:$0xff]  ;;  %v24_v2 = vld [vmem:[%s261_s1 + $0x8] sm:$0xff] }
   0x2   :  { %129 = vmatpush.msra.mxu3 %v26_v0  ;;  %50 = vmatpush.msra.mxu0 %v26_v0  ;;  %v70_v3 = vld [vmem:[%s263_s3 + $0x38] sm:$0xff]  ;;  %v69_v4 = vld [vmem:[%s263_s3 + $0x30] sm:$0xff]  ;;  %v23_v5 = vld [vmem:[%s261_s1] sm:$0xff] }
   0x3   :  { %133 = vmatpush.msra.mxu2 %v70_v3  ;;  %90 = vmatpush.msra.mxu1 %v70_v3 }
   0x4   :  { %130 = vmatpush.msra.mxu3 %v25_v1  ;;  %51 = vmatpush.msra.mxu0 %v25_v1 }
   0x5   :  { %10 = vsyncpa [#allocation3], 0  ;;  %v22_v6 = vld [vmem:[%s260_s0 + $0x8] sm:$0xff]  ;;  %vm31_vm0 = vcmask 261120   ;;  %v21_v7 = vld [vmem:[%s260_s0] sm:$0xff]  ;;  %134 = vmatpush.msra.mxu2 %v69_v4  ;;  %91 = vmatpush.msra.mxu1 %v69_v4  ;;  %vm75_vm1 = vcmask 523264  }
   0x6   :  { %131 = vmatpush.msra.mxu3 %v24_v2  ;;  %52 = vmatpush.msra.mxu0 %v24_v2  ;;  %v68_v8 = vld [vmem:[%s263_s3 + $0x28] sm:$0xff]  ;;  %v67_v9 = vld [vmem:[%s263_s3 + $0x20] sm:$0xff]  ;;  %v66_v10 = vld [vmem:[%s263_s3 + $0x18] sm:$0xff]  ;;  %s113_s25 = sshll.u32 %s265_s5, 4  ;;  %s173_s26 = smov 128   ;;  %s114_s25 = int_to_ptr.hbm [resolvable:$true] %s113_s25 }
   0x7   :  { %135 = vmatpush.msra.mxu2 %v68_v8  ;;  %92 = vmatpush.msra.mxu1 %v68_v8  ;;  %v65_v11 = vld [vmem:[%s263_s3 + $0x10] sm:$0xff]  ;;  %v64_v12 = vld [vmem:[%s263_s3 + $0x8] sm:$0xff]  ;;  %v63_v13 = vld [vmem:[%s263_s3] sm:$0xff]  ;;  %s172_s3 = smov [#allocation2]   ;;  %s174_s27 = smov 8  }
   0x8   :  { %132 = vmatpush.msra.mxu3 %v23_v5  ;;  %53 = vmatpush.msra.mxu0 %v23_v5  ;;  %v144_v14 = vld [vmem:[%s262_s2] ss:$0 sm:$0xff]  ;;  %s111_s23 = sshll.u32 %s172_s3, 4  ;;  %s112_s23 = int_to_ptr.vmem [resolvable:$true] %s111_s23 }
   0x9   :  { %126 = vmatmul.msk.f32.vlgmr.msra.gmra.mxu3 %vm31_vm0, %v22_v6  ;;  %125 = vmatmul.msk.f32.vlgmr.msra.gmra.mxu0 %vm31_vm0, %v21_v7  ;;  %v145_v21 = vld [vmem:[%s264_s4] ss:$0 sm:$0xff] }
   0xa   :  { %136 = vmatpush.msra.mxu2 %v67_v9  ;;  %93 = vmatpush.msra.mxu1 %v67_v9 }
   0xc   :  { %137 = vmatpush.msra.mxu2 %v66_v10  ;;  %94 = vmatpush.msra.mxu1 %v66_v10 }
   0xe   :  { %138 = vmatpush.msra.mxu2 %v65_v11  ;;  %95 = vmatpush.msra.mxu1 %v65_v11 }
  0x10   :  { %139 = vmatpush.msra.mxu2 %v64_v12  ;;  %96 = vmatpush.msra.mxu1 %v64_v12 }
  0x12   :  { %140 = vmatpush.msra.mxu2 %v63_v13  ;;  %97 = vmatpush.msra.mxu1 %v63_v13 }
  0x86   :  { %v55_v15 = vpop.f32.mrf.mxu0 }
  0x87   :  { %v56_v16 = vadd.f32 %v144_v14, %v55_v15 }
  0x89   :  { %v61_v17 = vmax.f32 %v56_v16, 0.0 }
  0x8b   :  { %127 = vmatmul.msk.f32.vlgmr.msra.gmra.mxu1 %vm75_vm1, %v61_v17 }
  0x8c   :  { %v58_v18 = vpop.f32.mrf.mxu3 }
  0x8d   :  { %v59_v19 = vadd.f32 %v144_v14, %v58_v18 }
  0x8f   :  { %v62_v20 = vmax.f32 %v59_v19, 0.0 }
  0x91   :  { %128 = vmatmul.msk.f32.vlgmr.msra.gmra.mxu2 %vm75_vm1, %v62_v20 }
 0x108   :  { %v99_v22 = vpop.f32.mrf.mxu1 }
 0x109   :  { %v100_v23 = vadd.f32 %v145_v21, %v99_v22 }
 0x10b   :  { %105 = vst.msk [vmem:[#allocation2] sm:$0xff] %vm31_vm0, %v100_v23 }
 0x114   :  { %v102_v24 = vpop.f32.mrf.mxu2 }
 0x115   :  { %v103_v25 = vadd.f32 %v145_v21, %v102_v24 }
 0x117   :  { %106 = vst.msk [vmem:[#allocation2 + $0x8] sm:$0xff] %vm31_vm0, %v103_v25 }
 0x118   :  { %119 = dma.vmem_to_hbm [thread:$0]  %s112_s23, 256, %s114_s25, [#allocation3], %s173_s26, %s173_s26, %s174_s27  }
 0x119   :  { %170 = dma.done.wait [#allocation3], 256  }
 0x11a   :  { %171 = vsyncadd [#allocation3], 4294967040 }
 0x11b   :  { %124 = vsyncpa [#allocation3], 1 }

</bundles_post_ra>
